<compile_context>
chip_gen: v7x
topology: tpu7x:2x2x1
jax: 0.10.0
libtpu: 0.0.40
codegen_flags: <defaults>
</compile_context>

<pallas_src>
import math as m

import numpy as np
import jax
import jax.numpy as jnp
from jax.experimental import pallas as pl
from jax.experimental.pallas import tpu as pltpu


def make_positional_embedding(embedding_dim: int, max_seq: int = 2048,
                              dtype=jnp.float32) -> jax.Array:
    """Exact reproduction of the module's __init__ sinusoid table, shape (1, max_seq, D).

    Pre-cast once at init to the model compute dtype (instead of casting every call).
    """
    table = np.array(
        [[[m.sin(pos * m.exp(-m.log(10000) * i / embedding_dim)
                 * m.exp(m.log(10000) / embedding_dim * (i % 2))
                 + 0.5 * m.pi * (i % 2))
           for i in range(embedding_dim)]
          for pos in range(max_seq)]]
    )
    return jnp.asarray(table, dtype=dtype)


def _add_pe_kernel(x_ref, pe_ref, o_ref):
    # x_ref/o_ref: (tb, tl) tile of the flattened (B, S*D) activations.
    # pe_ref: (1, tl) tile of the flattened table -> broadcast over rows (batch).
    o_ref[...] = x_ref[...] + pe_ref[...]


def _pick_tile(n: int, align: int, target: int) -> int:
    """Tile size for a dim of extent n: the full dim if n <= target, else the largest
    multiple of `align` that evenly divides n and is <= target; falls back to n."""
    if n <= target:
        return n
    t = (target // align) * align
    while t >= align:
        if n % t == 0:
            return t
        t -= align
    return n


_LANE_TILE_TARGET = 2048   # lanes per tile
_ROW_TILE_TARGET = 256     # rows per tile  (f32: 256 * 2048 * 4B = 2 MiB per input tile)


def dynamic_position_embedding(x: jax.Array, pe_full: jax.Array) -> jax.Array:
    """x: (B, S, D); pe_full: (1, max_seq, D). Returns x + pe_full[:, :S, :]."""
    B, S, D = x.shape
    _, max_seq, D_pe = pe_full.shape
    if D_pe != D:
        raise ValueError(f"embedding dim mismatch: x has D={D}, table has D={D_pe}")
    if S > max_seq:
        raise ValueError(f"sequence length {S} exceeds table max_seq {max_seq}")

    L = S * D                      # flattened lane extent per batch row
    x2 = x.reshape(B, L)           # lane-dense 2D view of the activations

    aligned = (L % 128 == 0)
    if aligned and pe_full.dtype == x.dtype:
        # Free reshape of the full table; the first S*D flattened columns are exactly
        # table[:, :S, :], selected through the BlockSpec (no slice/cast copy per call).
        pe2 = pe_full.reshape(1, max_seq * D)
        tl = _pick_tile(L, 128, _LANE_TILE_TARGET)
    else:
        # Fallback (ragged lane extent or dtype mismatch): materialize only the needed
        # slice in x.dtype and use the full lane extent as the (legal) block width.
        pe2 = pe_full.reshape(1, max_seq * D)[:, :L].astype(x.dtype)
        tl = L

    tb = _pick_tile(B, 8, _ROW_TILE_TARGET)
    grid = (L // tl, B // tb)      # batch/row axis innermost -> pe tile re-used, not re-DMA'd

    out2 = pl.pallas_call(
        _add_pe_kernel,
        out_shape=jax.ShapeDtypeStruct((B, L), x.dtype),
        grid_spec=pltpu.PrefetchScalarGridSpec(
            num_scalar_prefetch=0,
            grid=grid,
            in_specs=[
                pl.BlockSpec((tb, tl), lambda c, b: (b, c)),   # x tile
                pl.BlockSpec((1, tl), lambda c, b: (0, c)),    # pe tile (batch-broadcast)
            ],
            out_specs=pl.BlockSpec((tb, tl), lambda c, b: (b, c)),
        ),
        compiler_params=pltpu.CompilerParams(
            dimension_semantics=("parallel", "parallel"),
        ),
        input_output_aliases={0: 0},   # in-place add on x (no extra output HBM buffer)
    )(x2, pe2)

    return out2.reshape(B, S, D)


if __name__ == "__main__":
    MAX_SEQ = 2048
    key = jax.random.PRNGKey(0)

    # --- small shape implied by the module's forward: (batch=2, seq=8, hidden=32) ---
    B, S, D = 2, 8, 32
    x = jax.random.normal(key, (B, S, D), dtype=jnp.float32)
    pe_full = make_positional_embedding(D, MAX_SEQ, dtype=jnp.float32)

    ref = x + pe_full[:, :S, :]                      # pure-JAX reference (same math)
    out = jax.block_until_ready(dynamic_position_embedding(x, pe_full))
    np.testing.assert_allclose(np.asarray(out), np.asarray(ref), rtol=1e-6, atol=1e-6)

    # --- slightly larger shape to exercise the lane/row tiling + pe-reuse path ---
    B2, S2, D2 = 4, 64, 64
    key2 = jax.random.fold_in(key, 1)
    x_big = jax.random.normal(key2, (B2, S2, D2), dtype=jnp.float32)
    pe_big = make_positional_embedding(D2, MAX_SEQ, dtype=jnp.float32)

    ref_big = x_big + pe_big[:, :S2, :]
    out_big = jax.block_until_ready(dynamic_position_embedding(x_big, pe_big))
    np.testing.assert_allclose(np.asarray(out_big), np.asarray(ref_big),
                               rtol=1e-6, atol=1e-6)

    print("KERNEL_OK")
</pallas_src>

<mosaic_0001>
module attributes {stable_mosaic.version = 11 : i64} {
  func.func @_add_pe_kernel(%arg0: i32, %arg1: i32, %arg2: memref<2x256xf32, #tpu.memory_space<vmem>>, %arg3: memref<1x256xf32, #tpu.memory_space<vmem>>, %arg4: memref<2x256xf32, #tpu.memory_space<vmem>>) attributes {dimension_semantics = [#tpu.dimension_semantics<parallel>, #tpu.dimension_semantics<parallel>], iteration_bounds = array<i64: 1, 1>, scalar_prefetch = 0 : i64, scratch_operands = 0 : i64, tpu.core_type = #tpu.core_type<tc>, window_params = [{transform_indices = @transform_0, window_bounds = array<i64: 2, 256>}, {transform_indices = @transform_1, window_bounds = array<i64: 1, 256>}, {transform_indices = @transform_2, window_bounds = array<i64: 2, 256>}]} {
    %c0 = arith.constant 0 : index
    %c0_0 = arith.constant 0 : index
    %0 = vector.load %arg2[%c0, %c0_0] : memref<2x256xf32, #tpu.memory_space<vmem>>, vector<2x256xf32>
    %c0_1 = arith.constant 0 : index
    %c0_2 = arith.constant 0 : index
    %1 = vector.load %arg3[%c0_1, %c0_2] : memref<1x256xf32, #tpu.memory_space<vmem>>, vector<1x256xf32>
    %2 = vector.broadcast %1 : vector<1x256xf32> to vector<2x256xf32>
    %3 = arith.addf %0, %2 : vector<2x256xf32>
    %c0_3 = arith.constant 0 : index
    %c0_4 = arith.constant 0 : index
    %4 = vector.load %arg4[%c0_3, %c0_4] : memref<2x256xf32, #tpu.memory_space<vmem>>, vector<2x256xf32>
    tpu.vector_store %arg4[%c0_3, %c0_4], %3 {strides = array<i32>} : memref<2x256xf32, #tpu.memory_space<vmem>>, vector<2x256xf32>,
    return
  }
  func.func @transform_0(%arg0: i32, %arg1: i32) -> (i32, i32) {
    %c0_i32 = arith.constant 0 : i32
    return %arg1, %arg0 : i32, i32
  }
  func.func @transform_1(%arg0: i32, %arg1: i32) -> (i32, i32) {
    %c0_i32 = arith.constant 0 : i32
    %c0_i32_0 = arith.constant 0 : i32
    return %c0_i32, %arg0 : i32, i32
  }
  func.func @transform_2(%arg0: i32, %arg1: i32) -> (i32, i32) {
    %c0_i32 = arith.constant 0 : i32
    return %arg1, %arg0 : i32, i32
  }
}

</mosaic_0001>

<bundles_post_ra>
// kernel: tpu_custom_call.1
= control target key start
LH: loop header
LB: loop body
LE: loop exit
PB: predicated region body
PF: predicated region fallthrough
CT: control target
= control target key end

     0   :  { %7 = vsyncpa [#allocation3], 0  ;;  %s215_s0 = inlined_call_operand.hbm [shape: f32[2,256], index: 0, kind: input, shape index: {}, may-alias: {0,2}]   ;;  %s216_s1 = inlined_call_operand.hbm [shape: f32[1,65536], index: 1, kind: input, shape index: {}]   ;;  %s217_s2 = inlined_call_operand.hbm [shape: f32[2,256], index: 2, kind: output, shape index: {}, may-alias: {0,2}]  }
   0x1   :  { %8 = vsyncpa [#allocation6], 0 }
   0x2   :  { %9 = vsyncpa [#allocation4], 0  ;;  %s150_s9 = smov [#allocation2]   ;;  %s151_s11 = smov [#allocation5]  }
   0x3   :  { %s16_s10 = sshll.u32 %s150_s9, 4  ;;  %s26_s12 = sshll.u32 %s151_s11, 4  ;;  %s17_s10 = int_to_ptr.vmem [resolvable:$true] %s16_s10  ;;  %s169_s12 = int_to_ptr.vmem [resolvable:$true] %s26_s12 }
   0x4   :  { %s78_s15 = scalar_lea.hbm %s215_s0, 64 }
   0x5   :  { %p79_p0 = scmp.ne.s32.totalorder %s215_s0, %s78_s15  ;;  %p82_p1 = scmp.lt.u32.totalorder %s78_s15, %s215_s0 }
   0x7   :  { %p84_p2 = pnand %p82_p1, %p79_p0 }
   0x9   :  { %87 = shalt.err (!%p84_p2)
}
   0xa   :  { %s88_s20 = scalar_lea.vmem %s17_s10, 64  ;;  %p93_p4 = scmp.lt.s32.totalorder %s17_s10, %s17_s10 }
   0xb   :  { %p89_p3 = scmp.ne.s32.totalorder %s17_s10, %s88_s20  ;;  %p94_p5 = scmp.lt.s32.totalorder %s88_s20, %s88_s20 }
   0xd   :  { %p95_p6 = por %p94_p5, %p93_p4 }
   0xf   :  { %p96_p7 = pnand %p95_p6, %p89_p3 }
  0x11   :  { %99 = shalt.err (!%p96_p7)
}
  0x12   :  { %19 = dma.hbm_to_vmem [thread:$0]  %s215_s0, 64, %s17_s10, [#allocation3]  }
  0x13   :  { %s100_s25 = scalar_lea.hbm %s216_s1, 32  ;;  %s102_s30 = scalar_lea.hbm %s216_s1, 8192 }
  0x14   :  { %p101_p8 = scmp.ne.s32.totalorder %s216_s1, %s100_s25  ;;  %p103_p9 = scmp.lt.u32.totalorder %s102_s30, %s100_s25 }
  0x15   :  { %p104_p10 = scmp.lt.u32.totalorder %s100_s25, %s216_s1 }
  0x17   :  { %p105_p11 = por %p104_p10, %p103_p9 }
  0x19   :  { %p106_p12 = pnand %p105_p11, %p101_p8 }
  0x1b   :  { %109 = shalt.err (!%p106_p12)
}
  0x1c   :  { %s110_s0 = scalar_lea.vmem %s169_s12, 32  ;;  %p115_p0 = scmp.lt.s32.totalorder %s169_s12, %s169_s12 }
  0x1d   :  { %p111_p13 = scmp.ne.s32.totalorder %s169_s12, %s110_s0  ;;  %p116_p1 = scmp.lt.s32.totalorder %s110_s0, %s110_s0 }
  0x1f   :  { %p117_p2 = por %p116_p1, %p115_p0 }
  0x21   :  { %p118_p3 = pnand %p117_p2, %p111_p13 }
  0x23   :  { %121 = shalt.err (!%p118_p3)
}
  0x24   :  { %29 = dma.hbm_to_vmem [thread:$0]  %s216_s1, 32, %s169_s12, [#allocation6]  }
  0x25   :  { %144 = dma.done.wait [#allocation3], 64  }
  0x26   :  { %145 = vsyncadd [#allocation3], 4294967232 }
  0x27   :  { %146 = dma.done.wait [#allocation6], 32  }
  0x28   :  { %147 = vsyncadd [#allocation6], 4294967264  ;;  %v39_v0 = vlaneseq  ;;  %v152_v1 = vmov 1983009808   ;;  %v37_v7 = vld [vmem:[#allocation5] sm:$0x3] }
  0x29   :  { %v49_v2 = vunpack.c.l.s4 %v152_v1  ;;  %v36_v12 = vld [vmem:[#allocation2] sm:$0xf]  ;;  %s153_s7 = smov [#allocation7]  }
  0x2a   :  { %v40_v3 = vshrl.u32 %v39_v0, 7  ;;  %s64_s8 = sshll.u32 %s153_s7, 4  ;;  %s65_s8 = int_to_ptr.vmem [resolvable:$true] %s64_s8 }
  0x2b   :  { %v50_v6 = vunpack.c.0.s8 %v49_v2  ;;  %s122_s1 = scalar_lea.vmem %s65_s8, 64  ;;  %p127_p5 = scmp.lt.s32.totalorder %s65_s8, %s65_s8 }
  0x2c   :  { %v41_v4 = vsub.s32 0, %v40_v3  ;;  %v45_v5 = vsub.s32 1, %v40_v3  ;;  %p123_p4 = scmp.ne.s32.totalorder %s65_s8, %s122_s1  ;;  %p128_p6 = scmp.lt.s32.totalorder %s122_s1, %s122_s1 }
  0x2d   :  { %v53_v10 = vsub.s32 %v50_v6, %v40_v3 }
  0x2e   :  { %v42_v8 = vrot.slane %v37_v7, %v41_v4  ;;  %v46_v9 = vrot.slane %v37_v7, %v45_v5  ;;  %p129_p7 = por %p128_p6, %p127_p5 }
  0x30   :  { %v47_v11 = vcombine.low %v42_v8, %v46_v9  ;;  %p130_p8 = pnand %p129_p7, %p123_p4 }
  0x32   :  { %v54_v13 = vrot.slane %v47_v11, %v53_v10 }
  0x34   :  { %v56_v14 = vadd.f32 %v54_v13, %v36_v12 }
  0x36   :  { %57 = vst [vmem:[#allocation7] sm:$0xf] %v56_v14 }
  0x37   :  { %133 = shalt.err (!%p130_p8)
}
  0x38   :  { %s134_s11 = scalar_lea.hbm %s217_s2, 64 }
  0x39   :  { %p135_p9 = scmp.ne.s32.totalorder %s217_s2, %s134_s11  ;;  %p138_p10 = scmp.lt.u32.totalorder %s134_s11, %s217_s2 }
  0x3b   :  { %p140_p11 = pnand %p138_p10, %p135_p9 }
  0x3d   :  { %143 = shalt.err (!%p140_p11)
}
  0x3e   :  { %67 = dma.vmem_to_hbm [thread:$0]  %s65_s8, 64, %s217_s2, [#allocation4]  }
  0x3f   :  { %148 = dma.done.wait [#allocation4], 64  }
  0x40   :  { %149 = vsyncadd [#allocation4], 4294967232 }
  0x41   :  { %71 = vsyncpa [#allocation3], 1 }
  0x42   :  { %72 = vsyncpa [#allocation6], 1 }
  0x43   :  { %73 = vsyncpa [#allocation4], 1 }

</bundles_post_ra>
